<compile_context>
chip_gen: v5e
topology: v5e:2x2
jax: 0.10.0
libtpu: 0.0.40
codegen_flags: <defaults>
</compile_context>

<pallas_src>
import jax
import jax.numpy as jnp
from jax.experimental import pallas as pl
from jax.experimental.pallas import tpu as pltpu

LEAK = 0.1
BN_EPS = 1e-5
# MLP layer sizes from the module: 10 -> 16 -> 32 -> 64 -> 32 -> 16 -> 8 -> 2
MLP_DIMS = [10, 16, 32, 64, 32, 16, 8, 2]
N_LAYERS = len(MLP_DIMS) - 1
D_IN = MLP_DIMS[0]
D_OUT = MLP_DIMS[-1]

TILE_E = 4096  # edges per grid step (lane axis); multiple of 128, << VMEM.


def _leaky_relu(x, leak):
    return jnp.where(x > 0, x, leak * x)


def edge_only_kernel(e_ref, scale_ref, shift_ref, *rest):
    """One edge tile: BN affine + 7-layer MLP, fully transposed.

    e_ref:                (10, TILE_E) f32  raw edge features (transposed tile)
    scale_ref, shift_ref: (10, 1)      f32  folded BatchNorm batch statistics
    rest[2*i], rest[2*i+1]:  W_i^T (d_out, d_in) bf16,  b_i (d_out, 1) f32
    rest[-1]:             (2, TILE_E)  f32  output tile (lane-dense store)
    """
    out_ref = rest[-1]
    wb_refs = rest[:-1]

    # BatchNorm1d affine (batch stats hoisted to the wrapper), f32 on the VPU.
    x = e_ref[...] * scale_ref[...] + shift_ref[...]

    # edge_pred_mlp: (Lin + LeakyReLU) x6, final Lin.  bf16 MXU, f32 accumulate.
    for i in range(N_LAYERS):
        w = wb_refs[2 * i][...]          # (d_out, d_in) bf16
        b = wb_refs[2 * i + 1][...]      # (d_out, 1)    f32
        x = jnp.dot(w, x.astype(jnp.bfloat16),
                    preferred_element_type=jnp.float32) + b
        if i < N_LAYERS - 1:
            x = _leaky_relu(x, LEAK)

    out_ref[...] = x


def _round_up(n, m):
    return pl.cdiv(n, m) * m


def _bn_scale_shift(e, params):
    """Training-mode BatchNorm1d batch stats folded into a per-feature affine."""
    mean = jnp.mean(e, axis=0)
    var = jnp.mean(jnp.square(e - mean[None, :]), axis=0)  # biased variance
    scale = params["bn_gamma"].reshape(-1) * jax.lax.rsqrt(var + BN_EPS)
    shift = params["bn_beta"].reshape(-1) - mean * scale
    return scale, shift


def edge_only_forward(x, edge_index, e, xbatch, params, *, tile_e=TILE_E):
    """Mirrors EdgeOnlyModel.forward: only `e` is consumed."""
    del x, edge_index, xbatch  # unused by the PyTorch forward
    # TODO(synk): BatchNorm1d running_mean/running_var state updates are not
    # modeled (they do not affect the training-mode forward output).

    e = e.astype(jnp.float32)
    E = e.shape[0]

    # Cross-row BN statistics over the true E rows, hoisted out of the kernel.
    scale, shift = _bn_scale_shift(e, params)
    scale_c = scale.reshape(D_IN, 1)
    shift_c = shift.reshape(D_IN, 1)

    # Transposed bf16 weights / f32 column biases (kernel computes W^T @ x^T).
    wts = [w.T.astype(jnp.bfloat16) for w in params["weights"]]   # (d_out, d_in)
    bcs = [b.reshape(-1, 1).astype(jnp.float32) for b in params["biases"]]

    # Tile the edge (lane) axis; pad to a whole number of tiles.
    tile = min(tile_e, _round_up(E, 128))
    e_pad = _round_up(E, tile)
    et = jnp.zeros((D_IN, e_pad), jnp.float32).at[:, :E].set(e.T)

    inputs = [et, scale_c, shift_c]
    in_specs = [
        pl.BlockSpec((D_IN, tile), lambda i: (0, i)),   # streamed edge tile
        pl.BlockSpec((D_IN, 1), lambda i: (0, 0)),      # resident scale
        pl.BlockSpec((D_IN, 1), lambda i: (0, 0)),      # resident shift
    ]
    for wt, bc in zip(wts, bcs):
        inputs += [wt, bc]
        in_specs += [pl.BlockSpec(wt.shape, lambda i: (0, 0)),   # resident W^T
                     pl.BlockSpec(bc.shape, lambda i: (0, 0))]   # resident b

    out_t = pl.pallas_call(
        edge_only_kernel,
        out_shape=jax.ShapeDtypeStruct((D_OUT, e_pad), jnp.float32),
        grid=(e_pad // tile,),
        in_specs=in_specs,
        out_specs=pl.BlockSpec((D_OUT, tile), lambda i: (0, i)),
        compiler_params=pltpu.CompilerParams(
            dimension_semantics=("parallel",),      # megacore split on v7x
            vmem_limit_bytes=32 * 1024 * 1024,
        ),
    )(*inputs)

    edge_pred = out_t[:, :E].T   # back to (E, 2), drop padded edges
    return {"edge_pred": [edge_pred]}


def init_params(key):
    """Deterministic parameter init (shapes match the PyTorch module)."""
    params = {}
    # BatchNorm1d(10): gamma=1, beta=0 (PyTorch default init).
    params["bn_gamma"] = jnp.ones((1, D_IN), jnp.float32)
    params["bn_beta"] = jnp.zeros((1, D_IN), jnp.float32)
    ws, bs = [], []
    for i in range(N_LAYERS):
        d_in, d_out = MLP_DIMS[i], MLP_DIMS[i + 1]
        key, kw, kb = jax.random.split(key, 3)
        bound = 1.0 / jnp.sqrt(float(d_in))  # same range as torch Linear default
        ws.append(jax.random.uniform(kw, (d_in, d_out), jnp.float32, -bound, bound))
        bs.append(jax.random.uniform(kb, (1, d_out), jnp.float32, -bound, bound))
    params["weights"] = ws
    params["biases"] = bs
    return params


def _reference_forward_f32(e, params):
    """Pure-JAX f32 reference of the original PyTorch math."""
    mean = jnp.mean(e, axis=0, keepdims=True)
    var = jnp.mean((e - mean) ** 2, axis=0, keepdims=True)
    x = (e - mean) / jnp.sqrt(var + BN_EPS)
    x = x * params["bn_gamma"] + params["bn_beta"]
    for i in range(N_LAYERS):
        x = x @ params["weights"][i] + params["biases"][i]
        if i < N_LAYERS - 1:
            x = jnp.where(x > 0, x, LEAK * x)
    return x


def _reference_forward_bf16(e, params):
    """Pure-JAX reference with the kernel's bf16-operand / f32-accumulate math."""
    scale, shift = _bn_scale_shift(e, params)
    x = e * scale[None, :] + shift[None, :]
    for i in range(N_LAYERS):
        w = params["weights"][i].astype(jnp.bfloat16)
        x = jnp.dot(x.astype(jnp.bfloat16), w,
                    preferred_element_type=jnp.float32) + params["biases"][i]
        if i < N_LAYERS - 1:
            x = jnp.where(x > 0, x, LEAK * x)
    return x


if __name__ == "__main__":
    key = jax.random.PRNGKey(0)
    key, k_e, k_x, k_ei = jax.random.split(key, 4)

    num_nodes = 16
    num_edges = 64
    node_feats = 4

    # Inputs matching forward(x, edge_index, e, xbatch); only `e` is used.
    x = jax.random.normal(k_x, (num_nodes, node_feats), jnp.float32)
    edge_index = jax.random.randint(k_ei, (2, num_edges), 0, num_nodes, jnp.int32)
    e = jax.random.normal(k_e, (num_edges, D_IN), jnp.float32)
    xbatch = jnp.zeros((num_nodes,), jnp.int32)

    params = init_params(key)

    result = edge_only_forward(x, edge_index, e, xbatch, params)
    edge_pred = result["edge_pred"][0]
    jax.block_until_ready(edge_pred)

    assert edge_pred.shape == (num_edges, D_OUT)

    # Tight check: same bf16-operand / f32-accumulate math as the kernel.
    ref_bf16 = _reference_forward_bf16(e, params)
    assert jnp.allclose(edge_pred, ref_bf16, atol=1e-3, rtol=1e-3), float(
        jnp.max(jnp.abs(edge_pred - ref_bf16)))

    # Fidelity check against the full-f32 PyTorch-equivalent math.
    ref_f32 = _reference_forward_f32(e, params)
    assert jnp.allclose(edge_pred, ref_f32, atol=5e-2, rtol=5e-2), float(
        jnp.max(jnp.abs(edge_pred - ref_f32)))

    print("KERNEL_OK")
</pallas_src>

<mosaic_0001>
module attributes {stable_mosaic.version = 11 : i64} {
  func.func @edge_only_kernel(%arg0: i32, %arg1: memref<10x128xf32, #tpu.memory_space<vmem>>, %arg2: memref<10x1xf32, #tpu.memory_space<vmem>>, %arg3: memref<10x1xf32, #tpu.memory_space<vmem>>, %arg4: memref<16x10xbf16, #tpu.memory_space<vmem>>, %arg5: memref<16x1xf32, #tpu.memory_space<vmem>>, %arg6: memref<32x16xbf16, #tpu.memory_space<vmem>>, %arg7: memref<32x1xf32, #tpu.memory_space<vmem>>, %arg8: memref<64x32xbf16, #tpu.memory_space<vmem>>, %arg9: memref<64x1xf32, #tpu.memory_space<vmem>>, %arg10: memref<32x64xbf16, #tpu.memory_space<vmem>>, %arg11: memref<32x1xf32, #tpu.memory_space<vmem>>, %arg12: memref<16x32xbf16, #tpu.memory_space<vmem>>, %arg13: memref<16x1xf32, #tpu.memory_space<vmem>>, %arg14: memref<8x16xbf16, #tpu.memory_space<vmem>>, %arg15: memref<8x1xf32, #tpu.memory_space<vmem>>, %arg16: memref<2x8xbf16, #tpu.memory_space<vmem>>, %arg17: memref<2x1xf32, #tpu.memory_space<vmem>>, %arg18: memref<2x128xf32, #tpu.memory_space<vmem>>) attributes {dimension_semantics = [#tpu.dimension_semantics<parallel>], iteration_bounds = array<i64: 1>, scalar_prefetch = 0 : i64, scratch_operands = 0 : i64, tpu.core_type = #tpu.core_type<tc>, window_params = [{transform_indices = @transform_0, window_bounds = array<i64: 10, 128>}, {pipeline_mode = #tpu.pipeline_mode<synchronous>, transform_indices = @transform_1, window_bounds = array<i64: 10, 1>}, {pipeline_mode = #tpu.pipeline_mode<synchronous>, transform_indices = @transform_2, window_bounds = array<i64: 10, 1>}, {pipeline_mode = #tpu.pipeline_mode<synchronous>, transform_indices = @transform_3, window_bounds = array<i64: 16, 10>}, {pipeline_mode = #tpu.pipeline_mode<synchronous>, transform_indices = @transform_4, window_bounds = array<i64: 16, 1>}, {pipeline_mode = #tpu.pipeline_mode<synchronous>, transform_indices = @transform_5, window_bounds = array<i64: 32, 16>}, {pipeline_mode = #tpu.pipeline_mode<synchronous>, transform_indices = @transform_6, window_bounds = array<i64: 32, 1>}, {pipeline_mode = #tpu.pipeline_mode<synchronous>, transform_indices = @transform_7, window_bounds = array<i64: 64, 32>}, {pipeline_mode = #tpu.pipeline_mode<synchronous>, transform_indices = @transform_8, window_bounds = array<i64: 64, 1>}, {pipeline_mode = #tpu.pipeline_mode<synchronous>, transform_indices = @transform_9, window_bounds = array<i64: 32, 64>}, {pipeline_mode = #tpu.pipeline_mode<synchronous>, transform_indices = @transform_10, window_bounds = array<i64: 32, 1>}, {pipeline_mode = #tpu.pipeline_mode<synchronous>, transform_indices = @transform_11, window_bounds = array<i64: 16, 32>}, {pipeline_mode = #tpu.pipeline_mode<synchronous>, transform_indices = @transform_12, window_bounds = array<i64: 16, 1>}, {pipeline_mode = #tpu.pipeline_mode<synchronous>, transform_indices = @transform_13, window_bounds = array<i64: 8, 16>}, {pipeline_mode = #tpu.pipeline_mode<synchronous>, transform_indices = @transform_14, window_bounds = array<i64: 8, 1>}, {pipeline_mode = #tpu.pipeline_mode<synchronous>, transform_indices = @transform_15, window_bounds = array<i64: 2, 8>}, {pipeline_mode = #tpu.pipeline_mode<synchronous>, transform_indices = @transform_16, window_bounds = array<i64: 2, 1>}, {transform_indices = @transform_17, window_bounds = array<i64: 2, 128>}]} {
    %c0 = arith.constant 0 : index
    %c0_0 = arith.constant 0 : index
    %0 = vector.load %arg1[%c0, %c0_0] : memref<10x128xf32, #tpu.memory_space<vmem>>, vector<10x128xf32>
    %c0_1 = arith.constant 0 : index
    %c0_2 = arith.constant 0 : index
    %1 = vector.load %arg2[%c0_1, %c0_2] : memref<10x1xf32, #tpu.memory_space<vmem>>, vector<10x1xf32>
    %2 = vector.broadcast %1 : vector<10x1xf32> to vector<10x128xf32>
    %3 = arith.mulf %0, %2 : vector<10x128xf32>
    %c0_3 = arith.constant 0 : index
    %c0_4 = arith.constant 0 : index
    %4 = vector.load %arg3[%c0_3, %c0_4] : memref<10x1xf32, #tpu.memory_space<vmem>>, vector<10x1xf32>
    %5 = vector.broadcast %4 : vector<10x1xf32> to vector<10x128xf32>
    %6 = arith.addf %3, %5 : vector<10x128xf32>
    %c0_5 = arith.constant 0 : index
    %c0_6 = arith.constant 0 : index
    %7 = vector.load %arg4[%c0_5, %c0_6] : memref<16x10xbf16, #tpu.memory_space<vmem>>, vector<16x10xbf16>
    %c0_7 = arith.constant 0 : index
    %c0_8 = arith.constant 0 : index
    %8 = vector.load %arg5[%c0_7, %c0_8] : memref<16x1xf32, #tpu.memory_space<vmem>>, vector<16x1xf32>
    %9 = arith.truncf %6 : vector<10x128xf32> to vector<10x128xbf16>
    %cst = arith.constant dense<0.000000e+00> : vector<16x128xf32>
    %10 = tpu.matmul %7, %9, %cst {dimension_numbers = #tpu.dot_dimension_numbers<[1], [0], [0], [1], [0, 0, 1, 1], [], []>} : vector<16x10xbf16>, vector<10x128xbf16>, vector<16x128xf32> -> vector<16x128xf32>
    %11 = vector.broadcast %8 : vector<16x1xf32> to vector<16x128xf32>
    %12 = arith.addf %10, %11 : vector<16x128xf32>
    %cst_9 = arith.constant 0.000000e+00 : f32
    %13 = vector.broadcast %cst_9 : f32 to vector<16x128xf32>
    %14 = arith.cmpf ogt, %12, %13 : vector<16x128xf32>
    %cst_10 = arith.constant 1.000000e-01 : f32
    %15 = vector.broadcast %cst_10 : f32 to vector<16x128xf32>
    %16 = arith.mulf %15, %12 : vector<16x128xf32>
    %17 = arith.select %14, %12, %16 : vector<16x128xi1>, vector<16x128xf32>
    %c0_11 = arith.constant 0 : index
    %c0_12 = arith.constant 0 : index
    %18 = vector.load %arg6[%c0_11, %c0_12] : memref<32x16xbf16, #tpu.memory_space<vmem>>, vector<32x16xbf16>
    %c0_13 = arith.constant 0 : index
    %c0_14 = arith.constant 0 : index
    %19 = vector.load %arg7[%c0_13, %c0_14] : memref<32x1xf32, #tpu.memory_space<vmem>>, vector<32x1xf32>
    %20 = arith.truncf %17 : vector<16x128xf32> to vector<16x128xbf16>
    %cst_15 = arith.constant dense<0.000000e+00> : vector<32x128xf32>
    %21 = tpu.matmul %18, %20, %cst_15 {dimension_numbers = #tpu.dot_dimension_numbers<[1], [0], [0], [1], [0, 0, 1, 1], [], []>} : vector<32x16xbf16>, vector<16x128xbf16>, vector<32x128xf32> -> vector<32x128xf32>
    %22 = vector.broadcast %19 : vector<32x1xf32> to vector<32x128xf32>
    %23 = arith.addf %21, %22 : vector<32x128xf32>
    %cst_16 = arith.constant 0.000000e+00 : f32
    %24 = vector.broadcast %cst_16 : f32 to vector<32x128xf32>
    %25 = arith.cmpf ogt, %23, %24 : vector<32x128xf32>
    %cst_17 = arith.constant 1.000000e-01 : f32
    %26 = vector.broadcast %cst_17 : f32 to vector<32x128xf32>
    %27 = arith.mulf %26, %23 : vector<32x128xf32>
    %28 = arith.select %25, %23, %27 : vector<32x128xi1>, vector<32x128xf32>
    %c0_18 = arith.constant 0 : index
    %c0_19 = arith.constant 0 : index
    %29 = vector.load %arg8[%c0_18, %c0_19] : memref<64x32xbf16, #tpu.memory_space<vmem>>, vector<64x32xbf16>
    %c0_20 = arith.constant 0 : index
    %c0_21 = arith.constant 0 : index
    %30 = vector.load %arg9[%c0_20, %c0_21] : memref<64x1xf32, #tpu.memory_space<vmem>>, vector<64x1xf32>
    %31 = arith.truncf %28 : vector<32x128xf32> to vector<32x128xbf16>
    %cst_22 = arith.constant dense<0.000000e+00> : vector<64x128xf32>
    %32 = tpu.matmul %29, %31, %cst_22 {dimension_numbers = #tpu.dot_dimension_numbers<[1], [0], [0], [1], [0, 0, 1, 1], [], []>} : vector<64x32xbf16>, vector<32x128xbf16>, vector<64x128xf32> -> vector<64x128xf32>
    %33 = vector.broadcast %30 : vector<64x1xf32> to vector<64x128xf32>
    %34 = arith.addf %32, %33 : vector<64x128xf32>
    %cst_23 = arith.constant 0.000000e+00 : f32
    %35 = vector.broadcast %cst_23 : f32 to vector<64x128xf32>
    %36 = arith.cmpf ogt, %34, %35 : vector<64x128xf32>
    %cst_24 = arith.constant 1.000000e-01 : f32
    %37 = vector.broadcast %cst_24 : f32 to vector<64x128xf32>
    %38 = arith.mulf %37, %34 : vector<64x128xf32>
    %39 = arith.select %36, %34, %38 : vector<64x128xi1>, vector<64x128xf32>
    %c0_25 = arith.constant 0 : index
    %c0_26 = arith.constant 0 : index
    %40 = vector.load %arg10[%c0_25, %c0_26] : memref<32x64xbf16, #tpu.memory_space<vmem>>, vector<32x64xbf16>
    %c0_27 = arith.constant 0 : index
    %c0_28 = arith.constant 0 : index
    %41 = vector.load %arg11[%c0_27, %c0_28] : memref<32x1xf32, #tpu.memory_space<vmem>>, vector<32x1xf32>
    %42 = arith.truncf %39 : vector<64x128xf32> to vector<64x128xbf16>
    %cst_29 = arith.constant dense<0.000000e+00> : vector<32x128xf32>
    %43 = tpu.matmul %40, %42, %cst_29 {dimension_numbers = #tpu.dot_dimension_numbers<[1], [0], [0], [1], [0, 0, 1, 1], [], []>} : vector<32x64xbf16>, vector<64x128xbf16>, vector<32x128xf32> -> vector<32x128xf32>
    %44 = vector.broadcast %41 : vector<32x1xf32> to vector<32x128xf32>
    %45 = arith.addf %43, %44 : vector<32x128xf32>
    %cst_30 = arith.constant 0.000000e+00 : f32
    %46 = vector.broadcast %cst_30 : f32 to vector<32x128xf32>
    %47 = arith.cmpf ogt, %45, %46 : vector<32x128xf32>
    %cst_31 = arith.constant 1.000000e-01 : f32
    %48 = vector.broadcast %cst_31 : f32 to vector<32x128xf32>
    %49 = arith.mulf %48, %45 : vector<32x128xf32>
    %50 = arith.select %47, %45, %49 : vector<32x128xi1>, vector<32x128xf32>
    %c0_32 = arith.constant 0 : index
    %c0_33 = arith.constant 0 : index
    %51 = vector.load %arg12[%c0_32, %c0_33] : memref<16x32xbf16, #tpu.memory_space<vmem>>, vector<16x32xbf16>
    %c0_34 = arith.constant 0 : index
    %c0_35 = arith.constant 0 : index
    %52 = vector.load %arg13[%c0_34, %c0_35] : memref<16x1xf32, #tpu.memory_space<vmem>>, vector<16x1xf32>
    %53 = arith.truncf %50 : vector<32x128xf32> to vector<32x128xbf16>
    %cst_36 = arith.constant dense<0.000000e+00> : vector<16x128xf32>
    %54 = tpu.matmul %51, %53, %cst_36 {dimension_numbers = #tpu.dot_dimension_numbers<[1], [0], [0], [1], [0, 0, 1, 1], [], []>} : vector<16x32xbf16>, vector<32x128xbf16>, vector<16x128xf32> -> vector<16x128xf32>
    %55 = vector.broadcast %52 : vector<16x1xf32> to vector<16x128xf32>
    %56 = arith.addf %54, %55 : vector<16x128xf32>
    %cst_37 = arith.constant 0.000000e+00 : f32
    %57 = vector.broadcast %cst_37 : f32 to vector<16x128xf32>
    %58 = arith.cmpf ogt, %56, %57 : vector<16x128xf32>
    %cst_38 = arith.constant 1.000000e-01 : f32
    %59 = vector.broadcast %cst_38 : f32 to vector<16x128xf32>
    %60 = arith.mulf %59, %56 : vector<16x128xf32>
    %61 = arith.select %58, %56, %60 : vector<16x128xi1>, vector<16x128xf32>
    %c0_39 = arith.constant 0 : index
    %c0_40 = arith.constant 0 : index
    %62 = vector.load %arg14[%c0_39, %c0_40] : memref<8x16xbf16, #tpu.memory_space<vmem>>, vector<8x16xbf16>
    %c0_41 = arith.constant 0 : index
    %c0_42 = arith.constant 0 : index
    %63 = vector.load %arg15[%c0_41, %c0_42] : memref<8x1xf32, #tpu.memory_space<vmem>>, vector<8x1xf32>
    %64 = arith.truncf %61 : vector<16x128xf32> to vector<16x128xbf16>
    %cst_43 = arith.constant dense<0.000000e+00> : vector<8x128xf32>
    %65 = tpu.matmul %62, %64, %cst_43 {dimension_numbers = #tpu.dot_dimension_numbers<[1], [0], [0], [1], [0, 0, 1, 1], [], []>} : vector<8x16xbf16>, vector<16x128xbf16>, vector<8x128xf32> -> vector<8x128xf32>
    %66 = vector.broadcast %63 : vector<8x1xf32> to vector<8x128xf32>
    %67 = arith.addf %65, %66 : vector<8x128xf32>
    %cst_44 = arith.constant 0.000000e+00 : f32
    %68 = vector.broadcast %cst_44 : f32 to vector<8x128xf32>
    %69 = arith.cmpf ogt, %67, %68 : vector<8x128xf32>
    %cst_45 = arith.constant 1.000000e-01 : f32
    %70 = vector.broadcast %cst_45 : f32 to vector<8x128xf32>
    %71 = arith.mulf %70, %67 : vector<8x128xf32>
    %72 = arith.select %69, %67, %71 : vector<8x128xi1>, vector<8x128xf32>
    %c0_46 = arith.constant 0 : index
    %c0_47 = arith.constant 0 : index
    %73 = vector.load %arg16[%c0_46, %c0_47] : memref<2x8xbf16, #tpu.memory_space<vmem>>, vector<2x8xbf16>
    %c0_48 = arith.constant 0 : index
    %c0_49 = arith.constant 0 : index
    %74 = vector.load %arg17[%c0_48, %c0_49] : memref<2x1xf32, #tpu.memory_space<vmem>>, vector<2x1xf32>
    %75 = arith.truncf %72 : vector<8x128xf32> to vector<8x128xbf16>
    %cst_50 = arith.constant dense<0.000000e+00> : vector<2x128xf32>
    %76 = tpu.matmul %73, %75, %cst_50 {dimension_numbers = #tpu.dot_dimension_numbers<[1], [0], [0], [1], [0, 0, 1, 1], [], []>} : vector<2x8xbf16>, vector<8x128xbf16>, vector<2x128xf32> -> vector<2x128xf32>
    %77 = vector.broadcast %74 : vector<2x1xf32> to vector<2x128xf32>
    %78 = arith.addf %76, %77 : vector<2x128xf32>
    %c0_51 = arith.constant 0 : index
    %c0_52 = arith.constant 0 : index
    %79 = vector.load %arg18[%c0_51, %c0_52] : memref<2x128xf32, #tpu.memory_space<vmem>>, vector<2x128xf32>
    tpu.vector_store %arg18[%c0_51, %c0_52], %78 {strides = array<i32>} : memref<2x128xf32, #tpu.memory_space<vmem>>, vector<2x128xf32>,
    return
  }
  func.func @transform_0(%arg0: i32) -> (i32, i32) {
    %c0_i32 = arith.constant 0 : i32
    %c0_i32_0 = arith.constant 0 : i32
    return %c0_i32, %arg0 : i32, i32
  }
  func.func @transform_1(%arg0: i32) -> (i32, i32) {
    %c0_i32 = arith.constant 0 : i32
    %c0_i32_0 = arith.constant 0 : i32
    %c0_i32_1 = arith.constant 0 : i32
    return %c0_i32, %c0_i32_0 : i32, i32
  }
  func.func @transform_2(%arg0: i32) -> (i32, i32) {
    %c0_i32 = arith.constant 0 : i32
    %c0_i32_0 = arith.constant 0 : i32
    %c0_i32_1 = arith.constant 0 : i32
    return %c0_i32, %c0_i32_0 : i32, i32
  }
  func.func @transform_3(%arg0: i32) -> (i32, i32) {
    %c0_i32 = arith.constant 0 : i32
    %c0_i32_0 = arith.constant 0 : i32
    %c0_i32_1 = arith.constant 0 : i32
    return %c0_i32, %c0_i32_0 : i32, i32
  }
  func.func @transform_4(%arg0: i32) -> (i32, i32) {
    %c0_i32 = arith.constant 0 : i32
    %c0_i32_0 = arith.constant 0 : i32
    %c0_i32_1 = arith.constant 0 : i32
    return %c0_i32, %c0_i32_0 : i32, i32
  }
  func.func @transform_5(%arg0: i32) -> (i32, i32) {
    %c0_i32 = arith.constant 0 : i32
    %c0_i32_0 = arith.constant 0 : i32
    %c0_i32_1 = arith.constant 0 : i32
    return %c0_i32, %c0_i32_0 : i32, i32
  }
  func.func @transform_6(%arg0: i32) -> (i32, i32) {
    %c0_i32 = arith.constant 0 : i32
    %c0_i32_0 = arith.constant 0 : i32
    %c0_i32_1 = arith.constant 0 : i32
    return %c0_i32, %c0_i32_0 : i32, i32
  }
  func.func @transform_7(%arg0: i32) -> (i32, i32) {
    %c0_i32 = arith.constant 0 : i32
    %c0_i32_0 = arith.constant 0 : i32
    %c0_i32_1 = arith.constant 0 : i32
    return %c0_i32, %c0_i32_0 : i32, i32
  }
  func.func @transform_8(%arg0: i32) -> (i32, i32) {
    %c0_i32 = arith.constant 0 : i32
    %c0_i32_0 = arith.constant 0 : i32
    %c0_i32_1 = arith.constant 0 : i32
    return %c0_i32, %c0_i32_0 : i32, i32
  }
  func.func @transform_9(%arg0: i32) -> (i32, i32) {
    %c0_i32 = arith.constant 0 : i32
    %c0_i32_0 = arith.constant 0 : i32
    %c0_i32_1 = arith.constant 0 : i32
    return %c0_i32, %c0_i32_0 : i32, i32
  }
  func.func @transform_10(%arg0: i32) -> (i32, i32) {
    %c0_i32 = arith.constant 0 : i32
    %c0_i32_0 = arith.constant 0 : i32
    %c0_i32_1 = arith.constant 0 : i32
    return %c0_i32, %c0_i32_0 : i32, i32
  }
  func.func @transform_11(%arg0: i32) -> (i32, i32) {
    %c0_i32 = arith.constant 0 : i32
    %c0_i32_0 = arith.constant 0 : i32
    %c0_i32_1 = arith.constant 0 : i32
    return %c0_i32, %c0_i32_0 : i32, i32
  }
  func.func @transform_12(%arg0: i32) -> (i32, i32) {
    %c0_i32 = arith.constant 0 : i32
    %c0_i32_0 = arith.constant 0 : i32
    %c0_i32_1 = arith.constant 0 : i32
    return %c0_i32, %c0_i32_0 : i32, i32
  }
  func.func @transform_13(%arg0: i32) -> (i32, i32) {
    %c0_i32 = arith.constant 0 : i32
    %c0_i32_0 = arith.constant 0 : i32
    %c0_i32_1 = arith.constant 0 : i32
    return %c0_i32, %c0_i32_0 : i32, i32
  }
  func.func @transform_14(%arg0: i32) -> (i32, i32) {
    %c0_i32 = arith.constant 0 : i32
    %c0_i32_0 = arith.constant 0 : i32
    %c0_i32_1 = arith.constant 0 : i32
    return %c0_i32, %c0_i32_0 : i32, i32
  }
  func.func @transform_15(%arg0: i32) -> (i32, i32) {
    %c0_i32 = arith.constant 0 : i32
    %c0_i32_0 = arith.constant 0 : i32
    %c0_i32_1 = arith.constant 0 : i32
    return %c0_i32, %c0_i32_0 : i32, i32
  }
  func.func @transform_16(%arg0: i32) -> (i32, i32) {
    %c0_i32 = arith.constant 0 : i32
    %c0_i32_0 = arith.constant 0 : i32
    %c0_i32_1 = arith.constant 0 : i32
    return %c0_i32, %c0_i32_0 : i32, i32
  }
  func.func @transform_17(%arg0: i32) -> (i32, i32) {
    %c0_i32 = arith.constant 0 : i32
    %c0_i32_0 = arith.constant 0 : i32
    return %c0_i32, %arg0 : i32, i32
  }
}

</mosaic_0001>

<bundles_post_ra>
// kernel: tpu_custom_call.1
= control target key start
LH: loop header
LB: loop body
LE: loop exit
PB: predicated region body
PF: predicated region fallthrough
CT: control target
= control target key end

     0   :  { %s872_s0 = inlined_call_operand.vmem [shape: f32[10,128], index: 0, kind: input, shape index: {}]   ;;  %s873_s1 = inlined_call_operand.vmem [shape: f32[10,1], index: 1, kind: input, shape index: {}]   ;;  %s874_s2 = inlined_call_operand.vmem [shape: f32[10,1], index: 2, kind: input, shape index: {}]   ;;  %s875_s3 = inlined_call_operand.vmem [shape: bf16[16,10], index: 3, kind: input, shape index: {}]   ;;  %s876_s4 = inlined_call_operand.vmem [shape: f32[16,1], index: 4, kind: input, shape index: {}]   ;;  %s877_s5 = inlined_call_operand.vmem [shape: bf16[32,16], index: 5, kind: input, shape index: {}]   ;;  %s878_s6 = inlined_call_operand.vmem [shape: f32[32,1], index: 6, kind: input, shape index: {}]   ;;  %s879_s7 = inlined_call_operand.vmem [shape: bf16[64,32], index: 7, kind: input, shape index: {}]   ;;  %s880_s8 = inlined_call_operand.vmem [shape: f32[64,1], index: 8, kind: input, shape index: {}]   ;;  %s881_s9 = inlined_call_operand.vmem [shape: bf16[32,64], index: 9, kind: input, shape index: {}]   ;;  %s882_s10 = inlined_call_operand.vmem [shape: f32[32,1], index: 10, kind: input, shape index: {}]   ;;  %s883_s11 = inlined_call_operand.vmem [shape: bf16[16,32], index: 11, kind: input, shape index: {}]   ;;  %s884_s12 = inlined_call_operand.vmem [shape: f32[16,1], index: 12, kind: input, shape index: {}]   ;;  %s885_s13 = inlined_call_operand.vmem [shape: bf16[8,16], index: 13, kind: input, shape index: {}]   ;;  %s886_s14 = inlined_call_operand.vmem [shape: f32[8,1], index: 14, kind: input, shape index: {}]   ;;  %s887_s15 = inlined_call_operand.vmem [shape: bf16[2,8], index: 15, kind: input, shape index: {}]   ;;  %s888_s16 = inlined_call_operand.vmem [shape: f32[2,1], index: 16, kind: input, shape index: {}]   ;;  %s889_s17 = inlined_call_operand.hbm [shape: f32[2,128], index: 17, kind: output, shape index: {}]  }
   0x1   :  { %892 = sst [smem:[#allocation5_spill]] %s872_s0 }
   0x2   :  { %893 = sst [smem:[#allocation6_spill]] %s873_s1 }
   0x3   :  { %v74_v0 = vld [vmem:[%s874_s2] sm:$0xff]  ;;  %s894_s28 = sld [smem:[#allocation6_spill]]  ;;  %v649_v2 = vmov 0  }
   0x4   :  { %621 = vset.pattern.permute.xlu1 %v649_v2  ;;  %620 = vset.pattern.permute.xlu0 %v649_v2 }
   0x5   :  { %78 = vperm.xlu1 %621, %v74_v0   ;;  %622 = vset.pattern.permute.xlu2 %v649_v2 }
   0x9   :  { %v60_v1 = vld [vmem:[%s894_s28] sm:$0xff] }
   0xa   :  { %64 = vperm.xlu0 %620, %v60_v1  }
   0xb   :  { %22 = vsyncpa [#allocation3], 0  ;;  %v75_v3 = vld [vmem:[%s874_s2 + $0x8] sm:$0x3]  ;;  %v143_v5 = vld [vmem:[%s878_s6 + $0x18] sm:$0xff]  ;;  %vm112_vm0 = vcmask 1044480  }
   0xc   :  { %v61_v4 = vld [vmem:[%s894_s28 + $0x8] sm:$0x3]  ;;  %v142_v6 = vld [vmem:[%s878_s6 + $0x10] sm:$0xff]  ;;  %v225_v10 = vld [vmem:[%s880_s8 + $0x20] sm:$0xff]  ;;  %vm108_vm1 = vcmask 80896   ;;  %vm175_vm4 = vcmask 130048  }
   0xd   :  { %83 = vperm.xlu1 %621, %v75_v3   ;;  %v227_v7 = vld [vmem:[%s880_s8 + $0x30] sm:$0xff]  ;;  %v141_v8 = vld [vmem:[%s878_s6 + $0x8] sm:$0xff]  ;;  %v90_v11 = vld [vmem:[%s876_s4] sm:$0xff]  ;;  %vm291_vm9 = vcmask 261120   ;;  %s545_s28 = sshll.u32 %s889_s17, 4  ;;  %s546_s28 = int_to_ptr.hbm [resolvable:$true] %s545_s28 }
   0xe   :  { %v226_v9 = vld [vmem:[%s880_s8 + $0x28] sm:$0xff]  ;;  %95 = vperm.xlu2 %622, %v90_v11   ;;  %v221_v12 = vld [vmem:[%s880_s8] sm:$0xff]  ;;  %v224_v13 = vld [vmem:[%s880_s8 + $0x18] sm:$0xff] }
   0xf   :  { %v364_v14 = vld [vmem:[%s882_s10 + $0x18] sm:$0xff]  ;;  %v363_v15 = vld [vmem:[%s882_s10 + $0x10] sm:$0xff]  ;;  %v439_v16 = vld [vmem:[%s884_s12] sm:$0xff] }
  0x10   :  { %v362_v17 = vld [vmem:[%s882_s10 + $0x8] sm:$0xff]  ;;  %v509_v18 = vld [vmem:[%s888_s16] sm:$0x3]  ;;  %v228_v22 = vld [vmem:[%s880_s8 + $0x38] sm:$0xff] }
  0x11   :  { %v482_v19 = vld [vmem:[%s886_s14] sm:$0xff]  ;;  %v91_v20 = vld [vmem:[%s876_s4 + $0x8] sm:$0xff]  ;;  %v223_v23 = vld [vmem:[%s880_s8 + $0x10] sm:$0xff] }
  0x12   :  { %69 = vperm.xlu0 %620, %v61_v4   ;;  %v140_v21 = vld [vmem:[%s878_s6] sm:$0xff]  ;;  %v222_v26 = vld [vmem:[%s880_s8 + $0x8] sm:$0xff]  ;;  %s895_s6 = sld [smem:[#allocation5_spill]] }
  0x13   :  { %v361_v32 = vld [vmem:[%s882_s10] sm:$0xff]  ;;  %v440_v39 = vld [vmem:[%s884_s12 + $0x8] sm:$0xff] }
  0x14   :  { %v606_v38 = vld [vmem:[%s875_s3] sm:$0xff]  ;;  %v608_v52 = vld [vmem:[%s877_s5 + $0x8] sm:$0xff] }
  0x15   :  { %162 = vperm.xlu1 %621, %v143_v5   ;;  %v607_v51 = vld [vmem:[%s877_s5] sm:$0xff] }
  0x16   :  { %100 = vperm.xlu2 %622, %v91_v20   ;;  %v609_v11 = vld [vmem:[%s879_s7] sm:$0xff] }
  0x18   :  { %v58_v27 = vld [vmem:[%s895_s6] sm:$0xff]  ;;  %v59_v28 = vld [vmem:[%s895_s6 + $0x8] sm:$0x3] }
  0x1a   :  { %157 = vperm.xlu0 %620, %v142_v6  }
  0x1d   :  { %263 = vperm.xlu1 %621, %v227_v7  }
  0x1e   :  { %147 = vperm.xlu2 %622, %v140_v21  }
  0x22   :  { %152 = vperm.xlu0 %620, %v141_v8  }
  0x25   :  { %258 = vperm.xlu1 %621, %v226_v9  }
  0x26   :  { %268 = vperm.xlu2 %622, %v228_v22  }
  0x2a   :  { %253 = vperm.xlu0 %620, %v225_v10  }
  0x2d   :  { %233 = vperm.xlu1 %621, %v221_v12   ;;  %v612_v12 = vld [vmem:[%s879_s7 + $0x18] sm:$0xff] }
  0x2e   :  { %243 = vperm.xlu2 %622, %v223_v23  }
  0x32   :  { %248 = vperm.xlu0 %620, %v224_v13   ;;  %v610_v13 = vld [vmem:[%s879_s7 + $0x8] sm:$0xff] }
  0x35   :  { %386 = vperm.xlu1 %621, %v364_v14   ;;  %v611_v14 = vld [vmem:[%s879_s7 + $0x10] sm:$0xff] }
  0x36   :  { %238 = vperm.xlu2 %622, %v222_v26  }
  0x3a   :  { %381 = vperm.xlu0 %620, %v363_v15  }
  0x3d   :  { %445 = vperm.xlu1 %621, %v439_v16  }
  0x3e   :  { %371 = vperm.xlu2 %622, %v361_v32  }
  0x42   :  { %376 = vperm.xlu0 %620, %v362_v17  }
  0x45   :  { %513 = vperm.xlu1 %621, %v509_v18  }
  0x46   :  { %450 = vperm.xlu2 %622, %v440_v39  }
  0x4a   :  { %486 = vperm.xlu0 %620, %v482_v19  }
  0x68   :  { %v96_v40 = vpop.permute.xlu2 %95 }
  0x70   :  { %v101_v43 = vpop.permute.xlu2 %100 }
  0x77   :  { %v79_v24 = vpop.permute.xlu1 %78 }
  0x78   :  { %v148_v61 = vpop.permute.xlu2 %147 }
  0x7c   :  { %v65_v25 = vpop.permute.xlu0 %64 }
  0x7d   :  { %v72_v29 = vmul.f32 %v65_v25, %v58_v27 }
  0x7f   :  { %v84_v33 = vpop.permute.xlu1 %83  ;;  %v86_v34 = vadd.f32 %v79_v24, %v72_v29 }
  0x80   :  { %v269_v19 = vpop.permute.xlu2 %268 }
  0x84   :  { %v70_v30 = vpop.permute.xlu0 %69 }
  0x85   :  { %v73_v31 = vmul.f32 %v70_v30, %v59_v28 }
  0x87   :  { %v87_v35 = vadd.f32 %v84_v33, %v73_v31  ;;  %v163_v59 = vpop.permute.xlu1 %162 }
  0x88   :  { %v244_v31 = vpop.permute.xlu2 %243 }
  0x89   :  { %v92_v36 = vpack.c.bf16 %v87_v35, %v86_v34 }
  0x8b   :  { %v114_v37 = vsel %vm112_vm0, %v92_v36, 0 }
  0x8c   :  { %123 = vmatpush.bf16.msra.mxu0 %v114_v37  ;;  %v158_v55 = vpop.permute.xlu0 %157 }
  0x8f   :  { %558 = vmatmul.msk.bf16.vlgmr.msra.gmra.mxu0 %vm108_vm1, %v606_v38  ;;  %v264_v17 = vpop.permute.xlu1 %263 }
  0x94   :  { %v153_v58 = vpop.permute.xlu0 %152 }
  0x97   :  { %v259_v33 = vpop.permute.xlu1 %258 }
  0x9c   :  { %v254_v30 = vpop.permute.xlu0 %253 }
  0xa4   :  { %v249_v35 = vpop.permute.xlu0 %248 }
 0x10c   :  { %v125_v41 = vpop.f32.mrf.mxu0 }
 0x10d   :  { %v126_v42 = vadd.f32 %v125_v41, %v96_v40  ;;  %v239_v41 = vpop.permute.xlu2 %238 }
 0x10f   :  { %v132_v45 = vmul.f32 0.1, %v126_v42  ;;  %vm130_vm2 = vcmp.gt.f32.partialorder %v126_v42, 0.0 }
 0x111   :  { %v134_v48 = vsel %vm130_vm2, %v126_v42, %v132_v45  ;;  %v234_v45 = vpop.permute.xlu1 %233  ;;  %vm399_vm2 = vcmask 523264  }
 0x114   :  { %v127_v44 = vpop.f32.mrf.mxu0 }
 0x115   :  { %v128_v46 = vadd.f32 %v127_v44, %v101_v43 }
 0x117   :  { %v133_v47 = vmul.f32 0.1, %v128_v46  ;;  %vm131_vm3 = vcmp.gt.f32.partialorder %v128_v46, 0.0 }
 0x119   :  { %v135_v49 = vsel %vm131_vm3, %v128_v46, %v133_v47 }
 0x11a   :  { %v144_v50 = vpack.c.bf16 %v135_v49, %v134_v48 }
 0x11c   :  { %189 = vmatpush.bf16.msra.mxu1 %v144_v50 }
 0x11f   :  { %567 = vmatmul.msk.bf16.vlgmr.msra.gmra.mxu1 %vm175_vm4, %v607_v51 }
 0x12f   :  { %568 = vmatmul.msk.bf16.gmra.mxu1 %vm175_vm4, %v608_v52 }
 0x19c   :  { %v191_v53 = vpop.f32.mrf.mxu1 }
 0x19d   :  { %v192_v63 = vadd.f32 %v191_v53, %v148_v61 }
 0x19f   :  { %v205_v4 = vmul.f32 0.1, %v192_v63  ;;  %vm201_vm8 = vcmp.gt.f32.partialorder %v192_v63, 0.0 }
 0x1a1   :  { %v209_v9 = vsel %vm201_vm8, %v192_v63, %v205_v4  ;;  %v382_v63 = vpop.permute.xlu0 %381 }
 0x1a4   :  { %v193_v54 = vpop.f32.mrf.mxu1 }
 0x1a5   :  { %v194_v60 = vadd.f32 %v193_v54, %v153_v58 }
 0x1a7   :  { %v206_v2 = vmul.f32 0.1, %v194_v60  ;;  %vm202_vm7 = vcmp.gt.f32.partialorder %v194_v60, 0.0 }
 0x1a9   :  { %v210_v8 = vsel %vm202_vm7, %v194_v60, %v206_v2  ;;  %v614_v60 = vld [vmem:[%s881_s9 + $0x8] sm:$0xff]  ;;  %v377_v2 = vpop.permute.xlu0 %376 }
 0x1aa   :  { %v229_v10 = vpack.c.bf16 %v210_v8, %v209_v9 }
 0x1ac   :  { %v196_v56 = vpop.f32.mrf.mxu1 }
 0x1ad   :  { %v197_v57 = vadd.f32 %v196_v56, %v158_v55 }
 0x1af   :  { %v207_v0 = vmul.f32 0.1, %v197_v57  ;;  %vm203_vm5 = vcmp.gt.f32.partialorder %v197_v57, 0.0 }
 0x1b1   :  { %v211_v5 = vsel %vm203_vm5, %v197_v57, %v207_v0 }
 0x1b4   :  { %v198_v62 = vpop.f32.mrf.mxu1 }
 0x1b5   :  { %v199_v1 = vadd.f32 %v198_v62, %v163_v59  ;;  %v613_v59 = vld [vmem:[%s881_s9] sm:$0xff] }
 0x1b7   :  { %v208_v3 = vmul.f32 0.1, %v199_v1  ;;  %vm204_vm6 = vcmp.gt.f32.partialorder %v199_v1, 0.0 }
 0x1b9   :  { %v212_v6 = vsel %vm204_vm6, %v199_v1, %v208_v3  ;;  %v387_v3 = vpop.permute.xlu1 %386 }
 0x1ba   :  { %v230_v7 = vpack.c.bf16 %v212_v6, %v211_v5  ;;  %v372_v5 = vpop.permute.xlu2 %371 }
 0x1bc   :  { %310 = vmatpush.bf16.msra.mxu2 %v230_v7  ;;  %616 = vmatpush.bf16.msra.mxu3 %v230_v7 }
 0x1c0   :  { %311 = vmatpush.bf16.msra.mxu2 %v229_v10  ;;  %617 = vmatpush.bf16.msra.mxu3 %v229_v10 }
 0x1c3   :  { %585 = vmatmul.msk.bf16.vlgmr.msra.gmra.mxu2 %vm291_vm9, %v609_v11  ;;  %588 = vmatmul.msk.bf16.vlgmr.msra.gmra.mxu3 %vm291_vm9, %v612_v12 }
 0x1d3   :  { %586 = vmatmul.msk.bf16.gmra.mxu2 %vm291_vm9, %v610_v13 }
 0x1e3   :  { %587 = vmatmul.msk.bf16.gmra.mxu2 %vm291_vm9, %v611_v14 }
 0x246   :  { %v313_v15 = vpop.f32.mrf.mxu2  ;;  %v328_v16 = vpop.f32.mrf.mxu3 }
 0x247   :  { %v329_v18 = vadd.f32 %v328_v16, %v264_v17  ;;  %v314_v46 = vadd.f32 %v313_v15, %v234_v45 }
 0x249   :  { %v347_v22 = vmul.f32 0.1, %v329_v18  ;;  %vm339_vm10 = vcmp.gt.f32.partialorder %v329_v18, 0.0  ;;  %v341_v53 = vmul.f32 0.1, %v314_v46  ;;  %vm333_vm1 = vcmp.gt.f32.partialorder %v314_v46, 0.0 }
 0x24b   :  { %v355_v25 = vsel %vm339_vm10, %v329_v18, %v347_v22  ;;  %v349_v57 = vsel %vm333_vm1, %v314_v46, %v341_v53 }
 0x24e   :  { %v315_v20 = vpop.f32.mrf.mxu2  ;;  %v330_v21 = vpop.f32.mrf.mxu3 }
 0x24f   :  { %v331_v23 = vadd.f32 %v330_v21, %v269_v19  ;;  %v316_v42 = vadd.f32 %v315_v20, %v239_v41  ;;  %v615_v19 = vld [vmem:[%s883_s11] sm:$0xff]  ;;  %v446_v21 = vpop.permute.xlu1 %445 }
 0x251   :  { %v348_v24 = vmul.f32 0.1, %v331_v23  ;;  %vm340_vm11 = vcmp.gt.f32.partialorder %v331_v23, 0.0  ;;  %v342_v51 = vmul.f32 0.1, %v316_v42  ;;  %vm334_vm0 = vcmp.gt.f32.partialorder %v316_v42, 0.0 }
 0x253   :  { %v356_v26 = vsel %vm340_vm11, %v331_v23, %v348_v24  ;;  %v350_v56 = vsel %vm334_vm0, %v316_v42, %v342_v51  ;;  %v451_v23 = vpop.permute.xlu2 %450  ;;  %vm520_vm11 = vcmask 1043456  }
 0x254   :  { %v368_v27 = vpack.c.bf16 %v356_v26, %v355_v25  ;;  %v365_v58 = vpack.c.bf16 %v350_v56, %v349_v57 }
 0x256   :  { %v318_v28 = vpop.f32.mrf.mxu2  ;;  %410 = vmatpush.bf16.msrb.mxu3 %v368_v27 }
 0x257   :  { %v319_v38 = vadd.f32 %v318_v28, %v244_v31  ;;  %v481_v31 = vld [vmem:[%s885_s13] sm:$0xf]  ;;  %s650_s13 = smov [#allocation2]   ;;  %v514_v41 = vpop.permute.xlu1 %513 }
 0x258   :  { %s543_s26 = sshll.u32 %s650_s13, 4  ;;  %s544_s26 = int_to_ptr.vmem [resolvable:$true] %s543_s26 }
 0x259   :  { %v343_v47 = vmul.f32 0.1, %v319_v38  ;;  %vm335_vm15 = vcmp.gt.f32.partialorder %v319_v38, 0.0 }
 0x25b   :  { %v351_v54 = vsel %vm335_vm15, %v319_v38, %v343_v47 }
 0x25e   :  { %v320_v29 = vpop.f32.mrf.mxu2 }
 0x25f   :  { %v321_v36 = vadd.f32 %v320_v29, %v249_v35 }
 0x261   :  { %v344_v43 = vmul.f32 0.1, %v321_v36  ;;  %vm336_vm14 = vcmp.gt.f32.partialorder %v321_v36, 0.0 }
 0x263   :  { %v352_v52 = vsel %vm336_vm14, %v321_v36, %v344_v43 }
 0x264   :  { %v366_v55 = vpack.c.bf16 %v352_v52, %v351_v54 }
 0x266   :  { %v323_v32 = vpop.f32.mrf.mxu2 }
 0x267   :  { %v324_v34 = vadd.f32 %v323_v32, %v254_v30  ;;  %v487_v32 = vpop.permute.xlu0 %486 }
 0x269   :  { %v345_v39 = vmul.f32 0.1, %v324_v34  ;;  %vm337_vm12 = vcmp.gt.f32.partialorder %v324_v34, 0.0 }
 0x26b   :  { %v353_v48 = vsel %vm337_vm12, %v324_v34, %v345_v39  ;;  %vm516_vm12 = vcmask 64512  }
 0x26e   :  { %v325_v37 = vpop.f32.mrf.mxu2 }
 0x26f   :  { %v326_v40 = vadd.f32 %v325_v37, %v259_v33 }
 0x271   :  { %v346_v44 = vmul.f32 0.1, %v326_v40  ;;  %vm338_vm13 = vcmp.gt.f32.partialorder %v326_v40, 0.0 }
 0x273   :  { %v354_v49 = vsel %vm338_vm13, %v326_v40, %v346_v44  ;;  %v508_v40 = vld [vmem:[%s887_s15] sm:$0x1] }
 0x274   :  { %v367_v50 = vpack.c.bf16 %v354_v49, %v353_v48 }
 0x276   :  { %411 = vmatpush.bf16.msrb.mxu3 %v367_v50 }
 0x27a   :  { %412 = vmatpush.bf16.msrb.mxu3 %v366_v55 }
 0x27e   :  { %413 = vmatpush.bf16.msrb.mxu3 %v365_v58 }
 0x281   :  { %597 = vmatmul.msk.bf16.vlgmr.msrb.gmra.mxu3 %vm399_vm2, %v613_v59 }
 0x291   :  { %598 = vmatmul.msk.bf16.gmra.mxu3 %vm399_vm2, %v614_v60 }
 0x304   :  { %v415_v61 = vpop.f32.mrf.mxu3 }
 0x305   :  { %v416_v7 = vadd.f32 %v415_v61, %v372_v5 }
 0x307   :  { %v429_v12 = vmul.f32 0.1, %v416_v7  ;;  %vm425_vm7 = vcmp.gt.f32.partialorder %v416_v7, 0.0 }
 0x309   :  { %v433_v17 = vsel %vm425_vm7, %v416_v7, %v429_v12 }
 0x30c   :  { %v417_v62 = vpop.f32.mrf.mxu3 }
 0x30d   :  { %v418_v4 = vadd.f32 %v417_v62, %v377_v2 }
 0x30f   :  { %v430_v10 = vmul.f32 0.1, %v418_v4  ;;  %vm426_vm6 = vcmp.gt.f32.partialorder %v418_v4, 0.0 }
 0x311   :  { %v434_v16 = vsel %vm426_vm6, %v418_v4, %v430_v10 }
 0x312   :  { %v441_v18 = vpack.c.bf16 %v434_v16, %v433_v17 }
 0x314   :  { %v420_v0 = vpop.f32.mrf.mxu3 }
 0x315   :  { %v421_v1 = vadd.f32 %v420_v0, %v382_v63 }
 0x317   :  { %v431_v8 = vmul.f32 0.1, %v421_v1  ;;  %vm427_vm3 = vcmp.gt.f32.partialorder %v421_v1, 0.0 }
 0x319   :  { %v435_v13 = vsel %vm427_vm3, %v421_v1, %v431_v8 }
 0x31c   :  { %v422_v6 = vpop.f32.mrf.mxu3 }
 0x31d   :  { %v423_v9 = vadd.f32 %v422_v6, %v387_v3 }
 0x31f   :  { %v432_v11 = vmul.f32 0.1, %v423_v9  ;;  %vm428_vm5 = vcmp.gt.f32.partialorder %v423_v9, 0.0 }
 0x321   :  { %v436_v14 = vsel %vm428_vm5, %v423_v9, %v432_v11 }
 0x322   :  { %v442_v15 = vpack.c.bf16 %v436_v14, %v435_v13 }
 0x324   :  { %467 = vmatpush.bf16.msrb.mxu0 %v442_v15 }
 0x328   :  { %468 = vmatpush.bf16.msrb.mxu0 %v441_v18 }
 0x32b   :  { %603 = vmatmul.msk.bf16.vlgmr.msrb.gmra.mxu0 %vm291_vm9, %v615_v19 }
 0x3a8   :  { %v470_v20 = vpop.f32.mrf.mxu0 }
 0x3a9   :  { %v471_v22 = vadd.f32 %v470_v20, %v446_v21 }
 0x3ab   :  { %v477_v25 = vmul.f32 0.1, %v471_v22  ;;  %vm475_vm8 = vcmp.gt.f32.partialorder %v471_v22, 0.0 }
 0x3ad   :  { %v479_v28 = vsel %vm475_vm8, %v471_v22, %v477_v25 }
 0x3b0   :  { %v472_v24 = vpop.f32.mrf.mxu0 }
 0x3b1   :  { %v473_v26 = vadd.f32 %v472_v24, %v451_v23 }
 0x3b3   :  { %vm476_vm10 = vcmp.gt.f32.partialorder %v473_v26, 0.0  ;;  %v478_v27 = vmul.f32 0.1, %v473_v26 }
 0x3b5   :  { %v480_v29 = vsel %vm476_vm10, %v473_v26, %v478_v27 }
 0x3b6   :  { %v483_v30 = vpack.c.bf16 %v480_v29, %v479_v28 }
 0x3b8   :  { %499 = vmatpush.bf16.msra.mxu0 %v483_v30 }
 0x3bb   :  { %604 = vmatmul.msk.bf16.vlgmr.msra.gmra.mxu0 %vm175_vm4, %v481_v31 }
 0x438   :  { %v501_v33 = vpop.f32.mrf.mxu0 }
 0x439   :  { %v502_v34 = vadd.f32 %v501_v33, %v487_v32 }
 0x43b   :  { %v506_v35 = vmul.f32 0.1, %v502_v34  ;;  %vm505_vm9 = vcmp.gt.f32.partialorder %v502_v34, 0.0 }
 0x43d   :  { %v507_v36 = vsel %vm505_vm9, %v502_v34, %v506_v35 }
 0x43e   :  { %v510_v37 = vpack.c.bf16 %v507_v36, %v507_v36 }
 0x440   :  { %v503_v38 = vpop.f32.mrf.mxu0  ;;  %v522_v39 = vsel %vm520_vm11, %v510_v37, 0 }
 0x441   :  { %531 = vmatpush.bf16.msrb.mxu1 %v522_v39 }
 0x444   :  { %605 = vmatmul.msk.bf16.vlgmr.msrb.gmra.mxu1 %vm516_vm12, %v508_v40 }
 0x4c1   :  { %v533_v42 = vpop.f32.mrf.mxu1 }
 0x4c2   :  { %v534_v43 = vadd.f32 %v533_v42, %v514_v41 }
 0x4c4   :  { %537 = vst [vmem:[#allocation2] sm:$0x3] %v534_v43 }
 0x4c5   :  { %548 = dma.vmem_to_hbm [thread:$0]  %s544_s26, 32, %s546_s28, [#allocation3]  }
 0x4c9   :  { %v535_v44 = vpop.f32.mrf.mxu1 }
 0x4ca   :  { %647 = dma.done.wait [#allocation3], 32  }
 0x4cb   :  { %648 = vsyncadd [#allocation3], 4294967264 }
 0x4cc   :  { %553 = vsyncpa [#allocation3], 1 }

</bundles_post_ra>
